<compile_context>
chip_gen: v7x
topology: tpu7x:2x2x1
jax: 0.10.0
libtpu: 0.0.40
codegen_flags: <defaults>
</compile_context>

<pallas_src>
from functools import partial

import jax
import jax.numpy as jnp
from jax.experimental import pallas as pl
from jax.experimental.pallas import tpu as pltpu


def _round_up(x, m):
    return (x + m - 1) // m * m


# ------------------------------ fused kernel --------------------------------

def _encoder_kernel(p_ref, wconv_ref, a_ref, wclsT_ref, o_ref, acc_ref, *, cout):
    # p:     (Kp, TN)       bf16  im2col patch tile (+ ones row = conv bias, K zero-padded)
    # wconv: (Cout_p, Kp)   bf16  flattened conv weight (+ bias column, zero-padded)
    # a:     (B_p, TN)      bf16  block-diag averaging matrix tile (entries 1/HW)
    # wclsT: (Cout_p, E_p)  bf16  classifier weight^T; row `cout` holds the classifier bias
    # o:     (B_p, E_p)     f32   lane-dense padded output slab
    # acc:   (B_p, Cout_p)  f32   pooled-feature accumulator (VMEM scratch)
    i = pl.program_id(0)

    @pl.when(i == 0)
    def _():
        acc_ref[...] = jnp.zeros_like(acc_ref)

    # conv3x3 (bias folded into K) as a lane-dense MXU matmul + ReLU (f32, VPU).
    conv = jnp.dot(wconv_ref[...], p_ref[...],
                   preferred_element_type=jnp.float32)            # (Cout_p, TN)
    conv = jnp.maximum(conv, 0.0)

    # Partial global-average-pool on the MXU: einsum('bn,cn->bc'); A carries 1/HW.
    acc_ref[...] += jax.lax.dot_general(
        a_ref[...], conv.astype(jnp.bfloat16),
        dimension_numbers=(((1,), (1,)), ((), ())),
        preferred_element_type=jnp.float32)                       # (B_p, Cout_p)

    @pl.when(i == pl.num_programs(0) - 1)
    def _():
        pooled = acc_ref[...]
        # Hijack the zero-padded column `cout` as a ones column so that row
        # `cout` of wclsT (preloaded with the classifier bias) folds the bias
        # into the classifier matmul -- no separate bias tensor / VPU add.
        col = jax.lax.broadcasted_iota(jnp.int32, pooled.shape, 1)
        pooled = jnp.where(col == cout, 1.0, pooled)
        feats = jnp.dot(pooled.astype(jnp.bfloat16), wclsT_ref[...],
                        preferred_element_type=jnp.float32)       # (B_p, E_p)
        # ReLU; Dropout(0.5) = identity (eval-mode semantics).
        o_ref[...] = jnp.maximum(feats, 0.0).astype(o_ref.dtype)


# ------------------------------ wrapper / glue -------------------------------

def _im2col_3x3_same(x_nchw):
    """(B, C, H, W) -> (9*C, B*H*W); rows ordered (c, dh, dw), cols (b, h, w)."""
    B, C, H, W = x_nchw.shape
    xp = jnp.pad(x_nchw, ((0, 0), (0, 0), (1, 1), (1, 1)))
    taps = [xp[:, :, dh:dh + H, dw:dw + W] for dh in range(3) for dw in range(3)]
    p = jnp.stack(taps, axis=2)              # (B, C, 9, H, W)
    p = p.transpose(1, 2, 0, 3, 4)           # (C, 9, B, H, W)
    return p.reshape(C * 9, B * H * W)


@jax.jit
def encoder_cnn_forward(params, images_nchw):
    """EncoderCNN.forward: backbone -> classifier Linear -> ReLU -> Dropout(id)."""
    B, C, H, W = images_nchw.shape
    E, Cout = params["cls_w"].shape          # PyTorch nn.Linear layout (out, in)
    HW = H * W
    BHW = B * HW

    # Padded / MXU-friendly sizes.
    B_p = _round_up(max(B, 1), 8)
    E_p = _round_up(E, 128)
    Cout_p = _round_up(Cout + 1, 128)        # +1 reserves the classifier-bias column
    K = 9 * C + 1                            # +1 = ones row folding the conv bias
    Kp = _round_up(K, 128)

    assert BHW % 128 == 0, "toy spatial size must tile the 128-lane axis"
    TN = 256 if BHW % 256 == 0 else 128      # pixel tile (lane axis)
    grid = (BHW // TN,)

    # --- one-time wrapper-side prep (XLA): im2col, bias folds, pads, bf16 ----
    patches = _im2col_3x3_same(images_nchw)                                # (9C, BHW) f32
    patches = jnp.concatenate(
        [patches, jnp.ones((1, BHW), patches.dtype)], axis=0)             # conv-bias row
    patches = jnp.pad(patches, ((0, Kp - K), (0, 0))).astype(jnp.bfloat16)  # (Kp, BHW)

    wconv = jnp.concatenate(
        [params["conv_w"].reshape(Cout, 9 * C), params["conv_b"][:, None]], axis=1)
    wconv = jnp.pad(wconv, ((0, Cout_p - Cout), (0, Kp - K))).astype(jnp.bfloat16)

    # Block-diagonal averaging matrix: A[b, p] = 1/HW iff pixel p belongs to batch b.
    pix_batch = jnp.arange(BHW, dtype=jnp.int32) // HW
    A = (jnp.arange(B_p, dtype=jnp.int32)[:, None] == pix_batch[None, :])
    A = (A.astype(jnp.float32) / HW).astype(jnp.bfloat16)                 # (B_p, BHW)

    wclsT = jnp.zeros((Cout_p, E_p), jnp.float32)
    wclsT = wclsT.at[:Cout, :E].set(params["cls_w"].T)
    wclsT = wclsT.at[Cout, :E].set(params["cls_b"])                        # bias row
    wclsT = wclsT.astype(jnp.bfloat16)

    flops = (2 * Cout_p * Kp * BHW          # conv matmul
             + 2 * B_p * Cout_p * BHW       # pooling matmul
             + 2 * B_p * Cout_p * E_p)      # classifier matmul
    bytes_accessed = (patches.size + wconv.size + A.size + wclsT.size) * 2 + B_p * E_p * 4

    kernel = partial(_encoder_kernel, cout=Cout)
    out_padded = pl.pallas_call(
        kernel,
        out_shape=jax.ShapeDtypeStruct((B_p, E_p), jnp.float32),
        grid=grid,
        in_specs=[
            pl.BlockSpec((Kp, TN), lambda i: (0, i)),        # patch tile (streamed)
            pl.BlockSpec((Cout_p, Kp), lambda i: (0, 0)),    # conv weight (resident)
            pl.BlockSpec((B_p, TN), lambda i: (0, i)),       # averaging tile (streamed)
            pl.BlockSpec((Cout_p, E_p), lambda i: (0, 0)),   # classifier weight (resident)
        ],
        out_specs=pl.BlockSpec((B_p, E_p), lambda i: (0, 0)),
        scratch_shapes=[pltpu.VMEM((B_p, Cout_p), jnp.float32)],
        compiler_params=pltpu.CompilerParams(
            # Single grid axis is the pixel *reduction* -> "arbitrary".
            dimension_semantics=("arbitrary",),
            vmem_limit_bytes=32 * 1024 * 1024),
        cost_estimate=pl.CostEstimate(
            flops=flops, transcendentals=0, bytes_accessed=bytes_accessed),
    )(patches, wconv, A, wclsT)

    return out_padded[:B, :E]


def _encoder_reference(params, images_nchw):
    """Pure-JAX f32 reference of the same forward (for tolerance check)."""
    B, C, H, W = images_nchw.shape
    E, Cout = params["cls_w"].shape
    p = _im2col_3x3_same(images_nchw)                              # (9C, BHW)
    w = params["conv_w"].reshape(Cout, 9 * C)
    conv = jnp.maximum(w @ p + params["conv_b"][:, None], 0.0)     # (Cout, BHW)
    pooled = jnp.mean(conv.reshape(Cout, B, H * W), axis=-1).T     # (B, Cout)
    feats = jnp.maximum(pooled @ params["cls_w"].T + params["cls_b"][None], 0.0)
    return feats                                                   # (B, E)


def init_params(key, embed_size, conv_out_channels=8, in_channels=3):
    k = jax.random.split(key, 4)
    s = 0.1
    return {
        # stand-in backbone conv (PyTorch conv weight layout: Cout, Cin, kh, kw)
        "conv_w": s * jax.random.normal(k[0], (conv_out_channels, in_channels, 3, 3), jnp.float32),
        "conv_b": s * jax.random.normal(k[1], (conv_out_channels,), jnp.float32),
        # replaced classifier head: efficient_b1.classifier[1] = Linear(in, embed)
        "cls_w": s * jax.random.normal(k[2], (embed_size, conv_out_channels), jnp.float32),
        "cls_b": s * jax.random.normal(k[3], (embed_size,), jnp.float32),
    }


# ---------------------------------- main -------------------------------------

if __name__ == "__main__":
    embed_size = 32
    B, C, H, W = 2, 3, 16, 16

    key = jax.random.PRNGKey(0)
    k_img, k_par = jax.random.split(key)
    images = jax.random.normal(k_img, (B, C, H, W), jnp.float32)   # NCHW like PyTorch
    params = init_params(k_par, embed_size)

    feats = encoder_cnn_forward(params, images)
    feats = jax.block_until_ready(feats)

    assert feats.shape == (B, embed_size), feats.shape
    assert feats.dtype == jnp.float32
    assert bool(jnp.all(jnp.isfinite(feats)))

    # loose tolerance: kernel uses bf16 MXU operands, reference is pure f32
    ref = _encoder_reference(params, images)
    assert bool(jnp.allclose(feats, ref, atol=1e-1, rtol=1e-1)), (
        float(jnp.max(jnp.abs(feats - ref))))

    print("KERNEL_OK")
</pallas_src>

<mosaic_0001>
module attributes {stable_mosaic.version = 11 : i64} {
  func.func @_encoder_kernel(%arg0: i32, %arg1: memref<128x256xbf16, #tpu.memory_space<vmem>>, %arg2: memref<128x128xbf16, #tpu.memory_space<vmem>>, %arg3: memref<8x256xbf16, #tpu.memory_space<vmem>>, %arg4: memref<128x128xbf16, #tpu.memory_space<vmem>>, %arg5: memref<8x128xf32, #tpu.memory_space<vmem>>, %arg6: memref<8x128xf32, #tpu.memory_space<vmem>>) attributes {dimension_semantics = [#tpu.dimension_semantics<arbitrary>], iteration_bounds = array<i64: 2>, scalar_prefetch = 0 : i64, scratch_operands = 1 : i64, tpu.core_type = #tpu.core_type<tc>, window_params = [{transform_indices = @transform_0, window_bounds = array<i64: 128, 256>}, {pipeline_mode = #tpu.pipeline_mode<synchronous>, transform_indices = @transform_1, window_bounds = array<i64: 128, 128>}, {transform_indices = @transform_2, window_bounds = array<i64: 8, 256>}, {pipeline_mode = #tpu.pipeline_mode<synchronous>, transform_indices = @transform_3, window_bounds = array<i64: 128, 128>}, {pipeline_mode = #tpu.pipeline_mode<synchronous>, transform_indices = @transform_4, window_bounds = array<i64: 8, 128>}]} {
    %c0_i32 = arith.constant 0 : i32
    %0 = arith.cmpi eq, %arg0, %c0_i32 : i32
    %1 = arith.extui %0 : i1 to i32
    %c0_i32_0 = arith.constant 0 : i32
    %2 = arith.cmpi ne, %1, %c0_i32_0 : i32
    scf.if %2 {
      %cst_13 = arith.constant 0.000000e+00 : f32
      %17 = vector.broadcast %cst_13 : f32 to vector<8x128xf32>
      %c0_14 = arith.constant 0 : index
      %c0_15 = arith.constant 0 : index
      %18 = vector.load %arg6[%c0_14, %c0_15] : memref<8x128xf32, #tpu.memory_space<vmem>>, vector<8x128xf32>
      tpu.vector_store %arg6[%c0_14, %c0_15], %17 {strides = array<i32>} : memref<8x128xf32, #tpu.memory_space<vmem>>, vector<8x128xf32>,
    } else {
    }
    %c0 = arith.constant 0 : index
    %c0_1 = arith.constant 0 : index
    %3 = vector.load %arg2[%c0, %c0_1] : memref<128x128xbf16, #tpu.memory_space<vmem>>, vector<128x128xbf16>
    %c0_2 = arith.constant 0 : index
    %c0_3 = arith.constant 0 : index
    %4 = vector.load %arg1[%c0_2, %c0_3] : memref<128x256xbf16, #tpu.memory_space<vmem>>, vector<128x256xbf16>
    %cst = arith.constant dense<0.000000e+00> : vector<128x256xf32>
    %5 = tpu.matmul %3, %4, %cst {dimension_numbers = #tpu.dot_dimension_numbers<[1], [0], [0], [1], [0, 0, 1, 1], [], []>} : vector<128x128xbf16>, vector<128x256xbf16>, vector<128x256xf32> -> vector<128x256xf32>
    %cst_4 = arith.constant 0.000000e+00 : f32
    %6 = vector.broadcast %cst_4 : f32 to vector<128x256xf32>
    %7 = arith.maximumf %5, %6 : vector<128x256xf32>
    %c0_5 = arith.constant 0 : index
    %c0_6 = arith.constant 0 : index
    %8 = vector.load %arg6[%c0_5, %c0_6] : memref<8x128xf32, #tpu.memory_space<vmem>>, vector<8x128xf32>
    %c0_7 = arith.constant 0 : index
    %c0_8 = arith.constant 0 : index
    %9 = vector.load %arg3[%c0_7, %c0_8] : memref<8x256xbf16, #tpu.memory_space<vmem>>, vector<8x256xbf16>
    %10 = arith.truncf %7 : vector<128x256xf32> to vector<128x256xbf16>
    %cst_9 = arith.constant dense<0.000000e+00> : vector<8x128xf32>
    %11 = tpu.matmul %9, %10, %cst_9 {dimension_numbers = #tpu.dot_dimension_numbers<[1], [1], [0], [0], [0, 0, 1, 0], [], []>} : vector<8x256xbf16>, vector<128x256xbf16>, vector<8x128xf32> -> vector<8x128xf32>
    %12 = arith.addf %8, %11 : vector<8x128xf32>
    %c0_10 = arith.constant 0 : index
    %c0_11 = arith.constant 0 : index
    %13 = vector.load %arg6[%c0_10, %c0_11] : memref<8x128xf32, #tpu.memory_space<vmem>>, vector<8x128xf32>
    tpu.vector_store %arg6[%c0_10, %c0_11], %12 {strides = array<i32>} : memref<8x128xf32, #tpu.memory_space<vmem>>, vector<8x128xf32>,
    %c1_i32 = arith.constant 1 : i32
    %14 = arith.cmpi eq, %arg0, %c1_i32 : i32
    %15 = arith.extui %14 : i1 to i32
    %c0_i32_12 = arith.constant 0 : i32
    %16 = arith.cmpi ne, %15, %c0_i32_12 : i32
    scf.if %16 {
      %c0_13 = arith.constant 0 : index
      %c0_14 = arith.constant 0 : index
      %17 = vector.load %arg6[%c0_13, %c0_14] : memref<8x128xf32, #tpu.memory_space<vmem>>, vector<8x128xf32>
      %18 = tpu.iota {dimensions = array<i32: 1>} : vector<8x128xi32>
      %c8_i32 = arith.constant 8 : i32
      %19 = vector.broadcast %c8_i32 : i32 to vector<8x128xi32>
      %20 = arith.cmpi eq, %18, %19 : vector<8x128xi32>
      %cst_15 = arith.constant 1.000000e+00 : f32
      %21 = vector.broadcast %cst_15 : f32 to vector<8x128xf32>
      %22 = arith.select %20, %21, %17 : vector<8x128xi1>, vector<8x128xf32>
      %23 = arith.truncf %22 : vector<8x128xf32> to vector<8x128xbf16>
      %c0_16 = arith.constant 0 : index
      %c0_17 = arith.constant 0 : index
      %24 = vector.load %arg4[%c0_16, %c0_17] : memref<128x128xbf16, #tpu.memory_space<vmem>>, vector<128x128xbf16>
      %cst_18 = arith.constant dense<0.000000e+00> : vector<8x128xf32>
      %25 = tpu.matmul %23, %24, %cst_18 {dimension_numbers = #tpu.dot_dimension_numbers<[1], [0], [0], [1], [0, 0, 1, 1], [], []>} : vector<8x128xbf16>, vector<128x128xbf16>, vector<8x128xf32> -> vector<8x128xf32>
      %cst_19 = arith.constant 0.000000e+00 : f32
      %26 = vector.broadcast %cst_19 : f32 to vector<8x128xf32>
      %27 = arith.maximumf %25, %26 : vector<8x128xf32>
      %c0_20 = arith.constant 0 : index
      %c0_21 = arith.constant 0 : index
      %28 = vector.load %arg5[%c0_20, %c0_21] : memref<8x128xf32, #tpu.memory_space<vmem>>, vector<8x128xf32>
      tpu.vector_store %arg5[%c0_20, %c0_21], %27 {strides = array<i32>} : memref<8x128xf32, #tpu.memory_space<vmem>>, vector<8x128xf32>,
    } else {
    }
    return
  }
  func.func @transform_0(%arg0: i32) -> (i32, i32) {
    %c0_i32 = arith.constant 0 : i32
    %c0_i32_0 = arith.constant 0 : i32
    return %c0_i32, %arg0 : i32, i32
  }
  func.func @transform_1(%arg0: i32) -> (i32, i32) {
    %c0_i32 = arith.constant 0 : i32
    %c0_i32_0 = arith.constant 0 : i32
    %c0_i32_1 = arith.constant 0 : i32
    return %c0_i32, %c0_i32_0 : i32, i32
  }
  func.func @transform_2(%arg0: i32) -> (i32, i32) {
    %c0_i32 = arith.constant 0 : i32
    %c0_i32_0 = arith.constant 0 : i32
    return %c0_i32, %arg0 : i32, i32
  }
  func.func @transform_3(%arg0: i32) -> (i32, i32) {
    %c0_i32 = arith.constant 0 : i32
    %c0_i32_0 = arith.constant 0 : i32
    %c0_i32_1 = arith.constant 0 : i32
    return %c0_i32, %c0_i32_0 : i32, i32
  }
  func.func @transform_4(%arg0: i32) -> (i32, i32) {
    %c0_i32 = arith.constant 0 : i32
    %c0_i32_0 = arith.constant 0 : i32
    %c0_i32_1 = arith.constant 0 : i32
    return %c0_i32, %c0_i32_0 : i32, i32
  }
}

</mosaic_0001>

<bundles_post_ra>
// kernel: encoder_cnn_forward.1
= control target key start
LH: loop header
LB: loop body
LE: loop exit
PB: predicated region body
PF: predicated region fallthrough
CT: control target
= control target key end

     0   :  { %s1042_s15 = smov 0   ;;  %s1044_s16 = smov 0   ;;  %s1193_s0 = inlined_call_operand.vmem [shape: bf16[128,512], index: 0, kind: input, shape index: {}]   ;;  %s1194_s1 = inlined_call_operand.vmem [shape: bf16[128,128], index: 1, kind: input, shape index: {}]   ;;  %s1195_s2 = inlined_call_operand.vmem [shape: bf16[8,512], index: 2, kind: input, shape index: {}]   ;;  %s1196_s3 = inlined_call_operand.vmem [shape: bf16[128,128], index: 3, kind: input, shape index: {}]   ;;  %s1197_s4 = inlined_call_operand.vmem [shape: f32[8,128], index: 4, kind: output, shape index: {}]  }
   0x1   :  { %s1046_s17 = smov 0  }
   0x2 LB: > { %s1058_s18 = sadd.s32 4294967295, %s1011_s17   ;;  %s1061_s19 = sadd.s32 1, %s1011_s17   ;;  %s1011_s17 = sphi %s1046_s17, %s1200_s17   ;;  %s1007_s16 = sphi %s1044_s16, %s1199_s16   ;;  %s1003_s15 = sphi %s1042_s15, %s1198_s15  }
   0x3   : > { %s18_s20 = ssub.s32 %s1011_s17, %s1061_s19  ;;  %s21_s21 = sadd.s32 1, %s1007_s16 }
   0x4   : > { %p19_p0 = scmp.eq.s32.totalorder %s18_s20, 0  ;;  %p28_p1 = scmp.ne.s32.totalorder %s1007_s16, %s1003_s15 }
   0x5   : > { %p29_p2 = scmp.eq.s32.totalorder %s1011_s17, 0  ;;  %p843_p4 = scmp.ge.s32.totalorder %s1011_s17, 2 }
   0x6   : > { %s1070_s22 = scalar_select %p19_p0, %s1007_s16, %s21_s21  }
   0x7   : > { %p30_p3 = por %p29_p2, %p28_p1  ;;  %149 = sbr.rel (%p843_p4) target bundleno = 26 (0x1a), region = 24 }
   0xe   : > { %152 = sbr.rel (!%p30_p3) target bundleno = 26 (0x1a), region = 28  ;;  %s154_s23 = sand.u32 (%p30_p3), 1, %s1007_s16  }
   0xf   : > { %s889_s24 = sshll.u32 (%p30_p3), %s1011_s17, 3  ;;  %s844_s25 = sshll.u32 (%p30_p3), %s154_s23, 7 }
  0x10   : > { %s1078_s28 = scalar_lea.vmem (%p30_p3), %s1193_s0, %s889_s24  ;;  %s156_s29 = scalar_lea.vmem (%p30_p3), [#allocation3], %s844_s25 }
  0x11   : > { %v217_v0 = vld [vmem:[%s1078_s28] sm:$0xff] (%p30_p3)  ;;  %v219_v1 = vld [vmem:[%s1078_s28 + $0x10] sm:$0xff] (%p30_p3) }
  0x12   : > { %v221_v2 = vld [vmem:[%s1078_s28 + $0x20] sm:$0xff] (%p30_p3)  ;;  %218 = vst [vmem:[%s156_s29] sm:$0xff] (%p30_p3), %v217_v0  ;;  %220 = vst [vmem:[%s156_s29 + $0x8] sm:$0xff] (%p30_p3), %v219_v1  ;;  %v223_v3 = vld [vmem:[%s1078_s28 + $0x30] sm:$0xff] (%p30_p3) }
  0x13   : > { %222 = vst [vmem:[%s156_s29 + $0x10] sm:$0xff] (%p30_p3), %v221_v2  ;;  %v225_v4 = vld [vmem:[%s1078_s28 + $0x40] sm:$0xff] (%p30_p3)  ;;  %v227_v5 = vld [vmem:[%s1078_s28 + $0x50] sm:$0xff] (%p30_p3)  ;;  %224 = vst [vmem:[%s156_s29 + $0x18] sm:$0xff] (%p30_p3), %v223_v3 }
  0x14   : > { %226 = vst [vmem:[%s156_s29 + $0x20] sm:$0xff] (%p30_p3), %v225_v4  ;;  %228 = vst [vmem:[%s156_s29 + $0x28] sm:$0xff] (%p30_p3), %v227_v5  ;;  %v229_v6 = vld [vmem:[%s1078_s28 + $0x60] sm:$0xff] (%p30_p3)  ;;  %v231_v7 = vld [vmem:[%s1078_s28 + $0x70] sm:$0xff] (%p30_p3) }
  0x15   : > { %v233_v8 = vld [vmem:[%s1078_s28 + $0x80] sm:$0xff]  ;;  %230 = vst [vmem:[%s156_s29 + $0x30] sm:$0xff] %v229_v6  ;;  %232 = vst [vmem:[%s156_s29 + $0x38] sm:$0xff] %v231_v7  ;;  %v235_v9 = vld [vmem:[%s1078_s28 + $0x90] sm:$0xff] }
  0x16   : > { %234 = vst [vmem:[%s156_s29 + $0x40] sm:$0xff] %v233_v8  ;;  %v237_v10 = vld [vmem:[%s1078_s28 + $0xa0] sm:$0xff]  ;;  %v239_v11 = vld [vmem:[%s1078_s28 + $0xb0] sm:$0xff]  ;;  %236 = vst [vmem:[%s156_s29 + $0x48] sm:$0xff] %v235_v9 }
  0x17   : > { %238 = vst [vmem:[%s156_s29 + $0x50] sm:$0xff] %v237_v10  ;;  %240 = vst [vmem:[%s156_s29 + $0x58] sm:$0xff] %v239_v11  ;;  %v241_v12 = vld [vmem:[%s1078_s28 + $0xc0] sm:$0xff]  ;;  %v243_v13 = vld [vmem:[%s1078_s28 + $0xd0] sm:$0xff] }
  0x18   : > { %v245_v14 = vld [vmem:[%s1078_s28 + $0xe0] sm:$0xff]  ;;  %242 = vst [vmem:[%s156_s29 + $0x60] sm:$0xff] %v241_v12  ;;  %244 = vst [vmem:[%s156_s29 + $0x68] sm:$0xff] %v243_v13  ;;  %v247_v15 = vld [vmem:[%s1078_s28 + $0xf0] sm:$0xff] }
  0x19   : > { %246 = vst [vmem:[%s156_s29 + $0x70] sm:$0xff] %v245_v14  ;;  %248 = vst [vmem:[%s156_s29 + $0x78] sm:$0xff] %v247_v15 }
  0x1a PF: > { %p847_p5 = scmp.ge.s32.totalorder %s1011_s17, 1  ;;  %p262_p6 = scmp.lt.s32.totalorder %s1011_s17, 3 }
  0x1c   : > { %p263_p7 = pnand %p847_p5, %p262_p6 }
  0x1d   : > { %s269_s30 = sand.u32 (!%p263_p7), 1, %s1003_s15   ;;  %s849_s5 = sshll.u32 (!%p263_p7), %s1058_s18, 1 }
  0x1e   : > { %266 = sbr.rel (%p263_p7) target bundleno = 800 (0x320), region = 70  ;;  %s848_s6 = sshll.u32 (!%p263_p7), %s269_s30, 7 }
  0x1f   : > { %p296_p8 = scmp.lt.s32.totalorder (!%p263_p7), %s849_s5, 3  ;;  %s1105_s11 = scalar_lea.vmem (!%p263_p7), [#allocation3], %s848_s6 }
  0x20   : > { %p851_p9 = scmp.ne.s32.totalorder (!%p263_p7), %s1058_s18, 0 }
  0x25   : > { %s1202_s5 = smov (!%p296_p8, %s849_s5), 3  ;;  %305 = sbr.rel (%p851_p9) target bundleno = 44 (0x2c), region = 78 }
  0x26   : > { %s850_s7 = sshll.u32 %s1202_s5, 2  ;;  %v1013_v16 = vmov (!%p851_p9), 0.0  }
  0x27   : > { %s1103_s10 = scalar_lea.vmem %s1195_s2, %s850_s7  ;;  %306 = vst [vmem:[#allocation2] sm:$0xff] (!%p851_p9), %v1013_v16 }
  0x2c PF: > { %v947_v17 = vld [vmem:[%s1105_s11 + $0x4] ss:$8 sps:$4 sm:$0xff]   ;;  %v949_v18 = vld [vmem:[%s1105_s11] ss:$8 sps:$4 sm:$0xff]   ;;  %v1014_v19 = vmov 0   ;;  %v971_v34 = vld [vmem:[%s1194_s1] sm:$0xff]  }
  0x2d   : > { %499 = vmatprep.mubr.bf16.mxu0 %v1014_v19  ;;  %467 = vmatprep.subr.bf16.mxu0 %v947_v17  ;;  %v950_v20 = vld [vmem:[%s1105_s11 + $0x14] ss:$8 sps:$4 sm:$0xff]   ;;  %v952_v21 = vld [vmem:[%s1105_s11 + $0x10] ss:$8 sps:$4 sm:$0xff]   ;;  %v953_v22 = vld [vmem:[%s1105_s11 + $0x24] ss:$8 sps:$4 sm:$0xff]  }
  0x2e   : > { %468 = vmatpush1.bf16.msra.mxu0 %v949_v18  ;;  %v955_v23 = vld [vmem:[%s1105_s11 + $0x20] ss:$8 sps:$4 sm:$0xff]   ;;  %v956_v24 = vld [vmem:[%s1105_s11 + $0x34] ss:$8 sps:$4 sm:$0xff]   ;;  %v958_v25 = vld [vmem:[%s1105_s11 + $0x30] ss:$8 sps:$4 sm:$0xff]  }
  0x2f   : > { %469 = vmatprep.subr.bf16.mxu0 %v950_v20  ;;  %v959_v26 = vld [vmem:[%s1105_s11 + $0x44] ss:$8 sps:$4 sm:$0xff]   ;;  %v961_v27 = vld [vmem:[%s1105_s11 + $0x40] ss:$8 sps:$4 sm:$0xff]   ;;  %v962_v28 = vld [vmem:[%s1105_s11 + $0x54] ss:$8 sps:$4 sm:$0xff]  }
  0x30   : > { %v964_v29 = vld [vmem:[%s1105_s11 + $0x50] ss:$8 sps:$4 sm:$0xff]   ;;  %v965_v30 = vld [vmem:[%s1105_s11 + $0x64] ss:$8 sps:$4 sm:$0xff]   ;;  %v967_v31 = vld [vmem:[%s1105_s11 + $0x60] ss:$8 sps:$4 sm:$0xff]  }
  0x31   : > { %v968_v32 = vld [vmem:[%s1105_s11 + $0x74] ss:$8 sps:$4 sm:$0xff]   ;;  %v970_v33 = vld [vmem:[%s1105_s11 + $0x70] ss:$8 sps:$4 sm:$0xff]   ;;  %v972_v35 = vld [vmem:[%s1194_s1 + $0x8] sm:$0xff]   ;;  %p878_p10 = scmp.ne.s32.totalorder %s1058_s18, 1 }
  0x32   : > { %470 = vmatpush1.bf16.msra.mxu0 %v952_v21  ;;  %v973_v36 = vld [vmem:[%s1194_s1 + $0x10] sm:$0xff]   ;;  %v974_v37 = vld [vmem:[%s1194_s1 + $0x18] sm:$0xff]   ;;  %v975_v38 = vld [vmem:[%s1194_s1 + $0x20] sm:$0xff]   ;;  %vm1016_vm0 = vmmov (!%p878_p10), 0  }
  0x33   : > { %471 = vmatprep.subr.bf16.mxu0 %v953_v22  ;;  %v976_v39 = vld [vmem:[%s1194_s1 + $0x28] sm:$0xff]   ;;  %v977_v40 = vld [vmem:[%s1194_s1 + $0x30] sm:$0xff]   ;;  %v978_v41 = vld [vmem:[%s1194_s1 + $0x38] sm:$0xff]  }
  0x34   : > { %v1149_v42 = vld [vmem:[%s1103_s10] sm:$0xff] }
  0x35   : > { %v877_v43 = vcombine.high %v1149_v42, %v1149_v42 }
  0x36   : > { %472 = vmatpush1.bf16.msra.mxu0 %v955_v23 }
  0x37   : > { %473 = vmatprep.subr.bf16.mxu0 %v956_v24  ;;  %669 = vmatprep.mubr.bf16.mxu1 %v877_v43 }
  0x3a   : > { %474 = vmatpush1.bf16.msra.mxu0 %v958_v25 }
  0x3b   : > { %475 = vmatprep.subr.bf16.mxu0 %v959_v26 }
  0x3e   : > { %476 = vmatpush1.bf16.msra.mxu0 %v961_v27 }
  0x3f   : > { %477 = vmatprep.subr.bf16.mxu0 %v962_v28 }
  0x42   : > { %478 = vmatpush1.bf16.msra.mxu0 %v964_v29 }
  0x43   : > { %479 = vmatprep.subr.bf16.mxu0 %v965_v30 }
  0x46   : > { %480 = vmatpush1.bf16.msra.mxu0 %v967_v31 }
  0x47   : > { %481 = vmatprep.subr.bf16.mxu0 %v968_v32 }
  0x4a   : > { %482 = vmatpush1.bf16.msra.mxu0 %v970_v33 }
  0x4d   : > { %500 = vmatmul.mubr.bf16.vlgmr.msra.gmra.mrb[0].mxu0 %v971_v34 }
  0x4e   : > { %509 = vmatprep.mubr.bf16.mxu0 %v1014_v19 }
  0x55   : > { %510 = vmatmul.mubr.bf16.gmra.mrb[4].mxu0 %v972_v35 }
  0x56   : > { %519 = vmatprep.mubr.bf16.mxu0 %v1014_v19 }
  0x5d   : > { %520 = vmatmul.mubr.bf16.gmra.mrb[8].mxu0 %v973_v36 }
  0x5e   : > { %529 = vmatprep.mubr.bf16.mxu0 %v1014_v19 }
  0x65   : > { %530 = vmatmul.mubr.bf16.gmra.mrb[12].mxu0 %v974_v37 }
  0x66   : > { %539 = vmatprep.mubr.bf16.mxu0 %v1014_v19 }
  0x6d   : > { %540 = vmatmul.mubr.bf16.gmra.mrb[16].mxu0 %v975_v38 }
  0x6e   : > { %549 = vmatprep.mubr.bf16.mxu0 %v1014_v19 }
  0x75   : > { %550 = vmatmul.mubr.bf16.gmra.mrb[20].mxu0 %v976_v39 }
  0x76   : > { %559 = vmatprep.mubr.bf16.mxu0 %v1014_v19 }
  0x7d   : > { %560 = vmatmul.mubr.bf16.gmra.mrb[24].mxu0 %v977_v40 }
  0x7e   : > { %569 = vmatprep.mubr.bf16.mxu0 %v1014_v19 }
  0x85   : > { %570 = vmatmul.mubr.bf16.gmra.mrb[28].mxu0 %v978_v41 }
 0x120   : > { %v501_v44 = vpop.f32.mrb[0].mxu0 }
 0x121   : > { %v503_v45 = vpop.f32.mrb[1].mxu0  ;;  %v580_v47 = vmax.f32 %v501_v44, 0.0 }
 0x122   : > { %v505_v46 = vpop.f32.mrb[2].mxu0  ;;  %v581_v50 = vmax.f32 %v503_v45, 0.0 }
 0x123   : > { %v582_v48 = vmax.f32 %v505_v46, 0.0  ;;  %v507_v49 = vpop.f32.mrb[3].mxu0 }
 0x124   : > { %v583_v51 = vmax.f32 %v507_v49, 0.0 }
 0x125   : > { %v614_v52 = vpack.c.bf16 %v582_v48, %v580_v47 }
 0x126   : > { %v615_v53 = vpack.c.bf16 %v583_v51, %v581_v50 }
 0x128   : > { %v511_v54 = vpop.f32.mrb[4].mxu0  ;;  %637 = vmatprep.subr.bf16.mxu1 %v615_v53 }
 0x129   : > { %v513_v55 = vpop.f32.mrb[5].mxu0  ;;  %638 = vmatpush1.bf16.xpose.msra.mxu1 %v614_v52  ;;  %v584_v57 = vmax.f32 %v511_v54, 0.0 }
 0x12a   : > { %v515_v56 = vpop.f32.mrb[6].mxu0  ;;  %v585_v60 = vmax.f32 %v513_v55, 0.0 }
 0x12b   : > { %v586_v58 = vmax.f32 %v515_v56, 0.0  ;;  %v517_v59 = vpop.f32.mrb[7].mxu0 }
 0x12c   : > { %v587_v61 = vmax.f32 %v517_v59, 0.0 }
 0x12d   : > { %v616_v62 = vpack.c.bf16 %v586_v58, %v584_v57 }
 0x12e   : > { %v617_v63 = vpack.c.bf16 %v587_v61, %v585_v60  ;;  %v876_v61 = vcombine.low %v1149_v42, %v1149_v42  ;;  %v982_v42 = vld [vmem:[%s1196_s3 + $0x8] sm:$0xff] (!%p878_p10)  }
 0x130   : > { %v521_v0 = vpop.f32.mrb[8].mxu0  ;;  %639 = vmatprep.subr.bf16.mxu1 %v617_v63 }
 0x131   : > { %v523_v1 = vpop.f32.mrb[9].mxu0  ;;  %640 = vmatpush1.bf16.xpose.msra.mxu1 %v616_v62  ;;  %v588_v3 = vmax.f32 %v521_v0, 0.0  ;;  %v612_v62 = vld [vmem:[#allocation2] sm:$0xff] }
 0x132   : > { %v525_v2 = vpop.f32.mrb[10].mxu0  ;;  %v589_v6 = vmax.f32 %v523_v1, 0.0 }
 0x133   : > { %v590_v4 = vmax.f32 %v525_v2, 0.0  ;;  %v527_v5 = vpop.f32.mrb[11].mxu0 }
 0x134   : > { %v591_v7 = vmax.f32 %v527_v5, 0.0  ;;  %v1015_v5 = vmov (!%p878_p10), 0.0  }
 0x135   : > { %v618_v8 = vpack.c.bf16 %v590_v4, %v588_v3  ;;  %v981_v4 = vld [vmem:[%s1196_s3] sm:$0xff] (!%p878_p10)   ;;  %899 = vmatprep.subr.bf16.mxu0 (!%p878_p10), %v1015_v5  ;;  %915 = vmatprep.mubr.msk.bf16.mxu0 (!%p878_p10), %vm1016_vm0, %v1015_v5 }
 0x136   : > { %v619_v9 = vpack.c.bf16 %v591_v7, %v589_v6  ;;  %900 = vmatpush3.bf16.msra.mxu0 (!%p878_p10), %v981_v4  ;;  %v983_v6 = vld [vmem:[%s1196_s3 + $0x10] sm:$0xff] (!%p878_p10)   ;;  %v984_v7 = vld [vmem:[%s1196_s3 + $0x18] sm:$0xff] (!%p878_p10)  }
 0x137   : > { %901 = vmatprep.subr.bf16.mxu0 (!%p878_p10), %v1015_v5 }
 0x138   : > { %v531_v10 = vpop.f32.mrb[12].mxu0  ;;  %641 = vmatprep.subr.bf16.mxu1 %v619_v9  ;;  %v684_v9 = vlaneseq (!%p878_p10) }
 0x139   : > { %v533_v11 = vpop.f32.mrb[13].mxu0  ;;  %642 = vmatpush1.bf16.xpose.msra.mxu1 %v618_v8  ;;  %v592_v13 = vmax.f32 %v531_v10, 0.0  ;;  %v985_v8 = vld [vmem:[%s1196_s3 + $0x20] sm:$0xff] (!%p878_p10)   ;;  %v986_v10 = vld [vmem:[%s1196_s3 + $0x28] sm:$0xff] (!%p878_p10)  }
 0x13a   : > { %v535_v12 = vpop.f32.mrb[14].mxu0  ;;  %v593_v16 = vmax.f32 %v533_v11, 0.0  ;;  %902 = vmatpush3.bf16.msra.mxu0 (!%p878_p10), %v982_v42  ;;  %v685_v11 = vand.u32 (!%p878_p10), 127, %v684_v9 }
 0x13b   : > { %v594_v14 = vmax.f32 %v535_v12, 0.0  ;;  %v537_v15 = vpop.f32.mrb[15].mxu0  ;;  %903 = vmatprep.subr.bf16.mxu0 (!%p878_p10), %v1015_v5  ;;  %v987_v12 = vld [vmem:[%s1196_s3 + $0x30] sm:$0xff] (!%p878_p10)  }
 0x13c   : > { %v595_v17 = vmax.f32 %v537_v15, 0.0  ;;  %vm686_vm1 = vcmp.eq.s32.totalorder (!%p878_p10), %v685_v11, 8 }
 0x13d   : > { %v620_v18 = vpack.c.bf16 %v594_v14, %v592_v13  ;;  %v988_v14 = vld [vmem:[%s1196_s3 + $0x38] sm:$0xff] (!%p878_p10)  }
 0x13e   : > { %v621_v19 = vpack.c.bf16 %v595_v17, %v593_v16  ;;  %904 = vmatpush3.bf16.msra.mxu0 (!%p878_p10), %v983_v6 }
 0x13f   : > { %905 = vmatprep.subr.bf16.mxu0 (!%p878_p10), %v1015_v5 }
 0x140   : > { %v541_v20 = vpop.f32.mrb[16].mxu0  ;;  %643 = vmatprep.subr.bf16.mxu1 %v621_v19 }
 0x141   : > { %v543_v21 = vpop.f32.mrb[17].mxu0  ;;  %644 = vmatpush1.bf16.xpose.msra.mxu1 %v620_v18  ;;  %v596_v23 = vmax.f32 %v541_v20, 0.0 }
 0x142   : > { %v545_v22 = vpop.f32.mrb[18].mxu0  ;;  %v597_v26 = vmax.f32 %v543_v21, 0.0  ;;  %906 = vmatpush3.bf16.msra.mxu0 (!%p878_p10), %v984_v7 }
 0x143   : > { %v598_v24 = vmax.f32 %v545_v22, 0.0  ;;  %v547_v25 = vpop.f32.mrb[19].mxu0  ;;  %907 = vmatprep.subr.bf16.mxu0 (!%p878_p10), %v1015_v5 }
 0x144   : > { %v599_v27 = vmax.f32 %v547_v25, 0.0 }
 0x145   : > { %v622_v28 = vpack.c.bf16 %v598_v24, %v596_v23 }
 0x146   : > { %v623_v29 = vpack.c.bf16 %v599_v27, %v597_v26  ;;  %908 = vmatpush3.bf16.msra.mxu0 (!%p878_p10), %v985_v8 }
 0x147   : > { %909 = vmatprep.subr.bf16.mxu0 (!%p878_p10), %v1015_v5 }
 0x148   : > { %v551_v30 = vpop.f32.mrb[20].mxu0  ;;  %645 = vmatprep.subr.bf16.mxu1 %v623_v29 }
 0x149   : > { %v553_v31 = vpop.f32.mrb[21].mxu0  ;;  %646 = vmatpush1.bf16.xpose.msra.mxu1 %v622_v28  ;;  %v600_v33 = vmax.f32 %v551_v30, 0.0 }
 0x14a   : > { %v555_v32 = vpop.f32.mrb[22].mxu0  ;;  %v601_v36 = vmax.f32 %v553_v31, 0.0  ;;  %910 = vmatpush3.bf16.msra.mxu0 (!%p878_p10), %v986_v10 }
 0x14b   : > { %v602_v34 = vmax.f32 %v555_v32, 0.0  ;;  %v557_v35 = vpop.f32.mrb[23].mxu0  ;;  %911 = vmatprep.subr.bf16.mxu0 (!%p878_p10), %v1015_v5 }
 0x14c   : > { %v603_v37 = vmax.f32 %v557_v35, 0.0 }
 0x14d   : > { %v624_v38 = vpack.c.bf16 %v602_v34, %v600_v33 }
 0x14e   : > { %v625_v39 = vpack.c.bf16 %v603_v37, %v601_v36  ;;  %912 = vmatpush3.bf16.msra.mxu0 (!%p878_p10), %v987_v12 }
 0x14f   : > { %913 = vmatprep.subr.bf16.mxu0 (!%p878_p10), %v1015_v5 }
 0x150   : > { %v561_v40 = vpop.f32.mrb[24].mxu0  ;;  %647 = vmatprep.subr.bf16.mxu1 %v625_v39 }
 0x151   : > { %v563_v41 = vpop.f32.mrb[25].mxu0  ;;  %648 = vmatpush1.bf16.xpose.msra.mxu1 %v624_v38  ;;  %v604_v44 = vmax.f32 %v561_v40, 0.0 }
 0x152   : > { %v565_v43 = vpop.f32.mrb[26].mxu0  ;;  %v605_v47 = vmax.f32 %v563_v41, 0.0  ;;  %914 = vmatpush3.bf16.msra.mxu0 (!%p878_p10), %v988_v14 }
 0x153   : > { %v606_v45 = vmax.f32 %v565_v43, 0.0  ;;  %v567_v46 = vpop.f32.mrb[27].mxu0 }
 0x154   : > { %v607_v48 = vmax.f32 %v567_v46, 0.0 }
 0x155   : > { %v626_v49 = vpack.c.bf16 %v606_v45, %v604_v44 }
 0x156   : > { %v627_v50 = vpack.c.bf16 %v607_v48, %v605_v47 }
 0x158   : > { %v571_v51 = vpop.f32.mrb[28].mxu0  ;;  %649 = vmatprep.subr.bf16.mxu1 %v627_v50 }
 0x159   : > { %v573_v52 = vpop.f32.mrb[29].mxu0  ;;  %650 = vmatpush1.bf16.xpose.msra.mxu1 %v626_v49  ;;  %v608_v54 = vmax.f32 %v571_v51, 0.0 }
 0x15a   : > { %v575_v53 = vpop.f32.mrb[30].mxu0  ;;  %v609_v57 = vmax.f32 %v573_v52, 0.0 }
 0x15b   : > { %v610_v55 = vmax.f32 %v575_v53, 0.0  ;;  %v577_v56 = vpop.f32.mrb[31].mxu0 }
 0x15c   : > { %v611_v58 = vmax.f32 %v577_v56, 0.0 }
 0x15d   : > { %v628_v59 = vpack.c.bf16 %v610_v55, %v608_v54 }
 0x15e   : > { %v629_v60 = vpack.c.bf16 %v611_v58, %v609_v57 }
 0x160   : > { %651 = vmatprep.subr.bf16.mxu1 %v629_v60 }
 0x161   : > { %652 = vmatpush1.bf16.xpose.msra.mxu1 %v628_v59 }
 0x168   : > { %670 = vmatmul.mubr.bf16.vlgmr.msra.gmra.mrb[0].mxu1 %v876_v61 }
 0x238   : > { %682 = sbr.rel (%p878_p10) target bundleno = 800 (0x320), region = 82 }
 0x23b   : > { %v671_v63 = vpop.f32.mrb[0].mxu1 }
 0x23c   : > { %v677_v0 = vadd.f32 %v671_v63, %v612_v62  ;;  %v673_v1 = vpop.f32.mrb[1].mxu1 }
 0x23d   : > { %v674_v2 = vpop.f32.mrb[2].mxu1 }
 0x23e   : > { %678 = vst [vmem:[#allocation2] sm:$0xff] %v677_v0  ;;  %v675_v3 = vpop.f32.mrb[3].mxu1 }
 0x245   : > { %v683_v13 = vld [vmem:[#allocation2] sm:$0xff] }
 0x246   : > { %v687_v15 = vsel %vm686_vm1, 1.0, %v683_v13 }
 0x247   : > { %v688_v16 = vpack.c.bf16 %v687_v15, %v687_v15 }
 0x249   : > { %916 = vmatmul.mubr.bf16.vlgmr.msra.gmra.mrb[0].mxu0 %v688_v16 }
 0x31c   : > { %v787_v17 = vpop.f32.mrb[0].mxu0 }
 0x31d   : > { %v793_v18 = vmax.f32 %v787_v17, 0.0  ;;  %v917_v19 = vpop.f32.mrb[1].mxu0 }
 0x31e   : > { %v790_v20 = vpop.f32.mrb[2].mxu0 }
 0x31f   : > { %794 = vst [vmem:[%s1197_s4] sm:$0xff] %v793_v18  ;;  %v918_v21 = vpop.f32.mrb[3].mxu0 }
 0x320 PF: > { %p11_p11 = scmp.ge.s32.totalorder %s1061_s19, 4   ;;  %s1198_s15 = smov %s1007_s16 }
 0x321   : > { %s1199_s16 = smov %s1070_s22  ;;  %s1200_s17 = smov %s1061_s19 }
 0x322   :  { %13 = sbr.rel (!%p11_p11) target bundleno = 2 (0x2), region = 116 }

</bundles_post_ra>
